<compile_context>
chip_gen: v5e
topology: v5e:2x2
jax: 0.10.0
libtpu: 0.0.40
codegen_flags: <defaults>
</compile_context>

<pallas_src>
from functools import partial

import jax
import jax.numpy as jnp
from jax.experimental import pallas as pl
from jax.experimental.pallas import tpu as pltpu


def basic_block_kernel(G, S, WC, x_ref, wb1_ref, wb2_ref, bias_ref, o_ref, pad_ref):
    # x_ref   : (bt, H/G, G*WC)   bf16  row-grouped merged-NHWC input tile
    # wb*_ref : ((G+2)*S, G*WC)   bf16  banded im2col conv weight (BN scale folded)
    # bias_ref: (2, G*WC)         f32   folded BN shifts (bn1, bn2), lane-tiled
    # o_ref   : (bt, H/G, G*WC)   bf16  output tile (lane-dense, unmasked store)
    # pad_ref : (bt, H/G+1, G*S)  bf16  padded scratch; group r, slot s holds
    #                                   padded image row r*G+s (S lanes each:
    #                                   [interior WC | always-zero tail])
    bt, HG, GWC = x_ref.shape
    M = bt * HG

    # One wide clear per grid step establishes the full zero halo (top/bottom
    # rows and every slot's tail lanes). Interior writes below only touch
    # lanes < WC of their slot, so the zeros persist for both convolutions.
    pad_ref[...] = jnp.zeros_like(pad_ref)

    x = x_ref[...]                                            # (bt, HG, G*WC) bf16

    def write_interior(act):
        # act: (bt, HG, G*WC); image row hg*G+g = padded row hg*G+g+1:
        #   g < G-1 -> scratch group hg,   slot g+1
        #   g = G-1 -> scratch group hg+1, slot 0
        for g in range(G - 1):
            pad_ref[:, 0:HG, (g + 1) * S:(g + 1) * S + WC] = act[:, :, g * WC:(g + 1) * WC]
        pad_ref[:, 1:HG + 1, 0:WC] = act[:, :, (G - 1) * WC:G * WC]

    def conv(wb_ref, bias):
        # Patch row for output group hg = [scratch group hg (G*S lanes) |
        # first 2*S lanes of group hg+1]; both slices are 128-lane aligned,
        # so the concat is shuffle-free. One MXU contraction per conv.
        lo = pad_ref[:, 0:HG, :]                              # (bt, HG, G*S)
        hi = pad_ref[:, 1:HG + 1, 0:2 * S]                    # (bt, HG, 2*S)
        patches = jnp.concatenate([lo, hi], axis=-1).reshape(M, (G + 2) * S)
        out = jnp.dot(patches, wb_ref[...],
                      preferred_element_type=jnp.float32)     # (M, G*WC) f32
        return out + bias

    # ---- conv1 -> bn1 -> relu ----
    write_interior(x)
    out1 = jnp.maximum(conv(wb1_ref, bias_ref[0:1, :]), 0.0)

    # ---- conv2 -> bn2 (reuse the same scratch; zero halo persists) ----
    write_interior(out1.astype(pad_ref.dtype).reshape(bt, HG, GWC))
    out2 = conv(wb2_ref, bias_ref[1:2, :])

    # ---- residual add + relu, stored lane-dense in bf16 ----
    identity = x.reshape(M, GWC).astype(jnp.float32)
    o_ref[...] = jnp.maximum(out2 + identity, 0.0).astype(o_ref.dtype).reshape(bt, HG, GWC)


def _banded_conv_weight(w_hwio, scale, W, G, S):
    """HWIO (3,3,Cin,Cout) * per-Cout scale -> ((G+2)*S, G*W*Cout) banded weight.

    Patch lane (dh*S + w_in*Cin + ci)  x  output lane (g*W*Cout + w_out*Cout + co)
    with dh = g + kh and w_in = w_out + kw - 1.  Taps falling outside [0, W)
    are simply dropped (that IS the zero padding); lanes >= W*Cin of each
    S-wide row slab are the always-zero tail and get zero weight rows.
    """
    Cin, Cout = w_hwio.shape[2], w_hwio.shape[3]
    w = w_hwio.astype(jnp.float32) * scale[None, None, None, :].astype(jnp.float32)
    R = jnp.zeros(((G + 2) * S, G * W * Cout), jnp.float32)
    iw = jnp.arange(W)
    for g in range(G):
        for kh in range(3):
            dh = g + kh
            for kw in range(3):
                # E[w_in, w_out] = 1 iff w_in == w_out + kw - 1 (in range)
                E = (iw[:, None] == iw[None, :] + (kw - 1)).astype(jnp.float32)
                block = jnp.kron(E, w[kh, kw])                # (W*Cin, W*Cout)
                R = R.at[dh * S:dh * S + W * Cin,
                         g * W * Cout:(g + 1) * W * Cout].add(block)
    return R


def basic_block_forward(x_nchw, w1_oihw, g1, beta1, m1, v1,
                        w2_oihw, g2, beta2, m2, v2, eps=1e-5,
                        max_batch_tile=16, row_group=2):
    """BasicBlock forward (stride=1, no downsample). x_nchw: (N, C, H, W) f32.

    row_group (G): image rows per matmul output row. G=2 -> 128 output lanes
    (good on all generations); G=4 -> 256 lanes for v6e/v7x when the batch is
    large enough to keep matmul M filled.
    """
    N, C, H, W = x_nchw.shape
    G = row_group
    assert H % G == 0, "H must be divisible by the row group"
    S = 128                                  # lanes per padded image-row slab
    assert W * C <= S, "W*C must fit in one 128-lane slab"
    WC, GWC, HG = W * C, G * W * C, H // G

    # Batch tile: grow it to fill the MXU M axis, but keep grid >= 2 whenever
    # N >= 2 so both v7x TensorCores get work under "parallel" semantics.
    cap = min(max_batch_tile, N)
    if N >= 2:
        cap = min(cap, N // 2)
    bt = next(c for c in range(max(cap, 1), 0, -1) if N % c == 0)

    # ---- wrapper-side layout & parameter prep (tiny one-off XLA ops) ----
    x_m = jnp.transpose(x_nchw, (0, 2, 3, 1)).reshape(N, HG, GWC).astype(jnp.bfloat16)

    s1 = g1 / jnp.sqrt(v1 + eps)
    s2 = g2 / jnp.sqrt(v2 + eps)
    wb1 = _banded_conv_weight(jnp.transpose(w1_oihw, (2, 3, 1, 0)), s1, W, G, S).astype(jnp.bfloat16)
    wb2 = _banded_conv_weight(jnp.transpose(w2_oihw, (2, 3, 1, 0)), s2, W, G, S).astype(jnp.bfloat16)
    bias = jnp.stack([jnp.tile(beta1 - m1 * s1, G * W),
                      jnp.tile(beta2 - m2 * s2, G * W)]).astype(jnp.float32)   # (2, GWC)

    out_m = pl.pallas_call(
        partial(basic_block_kernel, G, S, WC),
        out_shape=jax.ShapeDtypeStruct((N, HG, GWC), jnp.bfloat16),
        grid_spec=pltpu.PrefetchScalarGridSpec(
            num_scalar_prefetch=0,
            grid=(N // bt,),
            in_specs=[
                pl.BlockSpec((bt, HG, GWC), lambda n: (n, 0, 0)),
                pl.BlockSpec(((G + 2) * S, GWC), lambda n: (0, 0)),
                pl.BlockSpec(((G + 2) * S, GWC), lambda n: (0, 0)),
                pl.BlockSpec((2, GWC), lambda n: (0, 0)),
            ],
            out_specs=pl.BlockSpec((bt, HG, GWC), lambda n: (n, 0, 0)),
            scratch_shapes=[pltpu.VMEM((bt, HG + 1, G * S), jnp.bfloat16)],
        ),
        compiler_params=pltpu.CompilerParams(
            dimension_semantics=("parallel",)),
    )(x_m, wb1, wb2, bias)

    # Wrapper-side un-merge back to NCHW f32 (a consumer that is another block
    # could instead keep the merged (N, H/G, G*W*C) bf16 layout).
    return jnp.transpose(out_m.reshape(N, H, W, C), (0, 3, 1, 2)).astype(jnp.float32)


def reference_forward(x_nchw, w1_oihw, g1, beta1, m1, v1,
                      w2_oihw, g2, beta2, m2, v2, eps):
    """Pure-JAX f32 reference (XLA conv) for validation."""
    x = jnp.transpose(x_nchw, (0, 2, 3, 1))
    w1 = jnp.transpose(w1_oihw, (2, 3, 1, 0))
    w2 = jnp.transpose(w2_oihw, (2, 3, 1, 0))

    def conv(a, w):
        return jax.lax.conv_general_dilated(
            a, w, window_strides=(1, 1), padding="SAME",
            dimension_numbers=("NHWC", "HWIO", "NHWC"))

    o = conv(x, w1)
    o = (o - m1) / jnp.sqrt(v1 + eps) * g1 + beta1
    o = jnp.maximum(o, 0.0)
    o = conv(o, w2)
    o = (o - m2) / jnp.sqrt(v2 + eps) * g2 + beta2
    o = jnp.maximum(o + x, 0.0)
    return jnp.transpose(o, (0, 3, 1, 2))


if __name__ == "__main__":
    # Shapes consistent with BasicBlock(in_channel=4, out_channel=4, stride=1).
    N, C, H, W = 2, 4, 16, 16
    eps = 1e-5

    key = jax.random.PRNGKey(0)
    keys = jax.random.split(key, 11)

    x = jax.random.normal(keys[0], (N, C, H, W), jnp.float32)

    # Conv weights in PyTorch OIHW layout (out, in, kh, kw), no bias.
    w1 = 0.1 * jax.random.normal(keys[1], (C, C, 3, 3), jnp.float32)
    w2 = 0.1 * jax.random.normal(keys[2], (C, C, 3, 3), jnp.float32)

    # Deterministic BatchNorm parameters (eval mode).
    g1 = 1.0 + 0.1 * jax.random.normal(keys[3], (C,), jnp.float32)
    beta1 = 0.1 * jax.random.normal(keys[4], (C,), jnp.float32)
    m1 = 0.1 * jax.random.normal(keys[5], (C,), jnp.float32)
    v1 = 0.5 + jax.random.uniform(keys[6], (C,), jnp.float32)

    g2 = 1.0 + 0.1 * jax.random.normal(keys[7], (C,), jnp.float32)
    beta2 = 0.1 * jax.random.normal(keys[8], (C,), jnp.float32)
    m2 = 0.1 * jax.random.normal(keys[9], (C,), jnp.float32)
    v2 = 0.5 + jax.random.uniform(keys[10], (C,), jnp.float32)

    out = basic_block_forward(x, w1, g1, beta1, m1, v1,
                              w2, g2, beta2, m2, v2, eps)
    out = jax.block_until_ready(out)

    ref = reference_forward(x, w1, g1, beta1, m1, v1,
                            w2, g2, beta2, m2, v2, eps)
    ref = jax.block_until_ready(ref)

    max_err = float(jnp.max(jnp.abs(out - ref)))
    assert out.shape == (N, C, H, W)
    # Kernel runs bf16 activations/weights/output with f32 MXU accumulation
    # (BN scale folded into bf16 weights) vs an f32 reference.
    assert max_err < 1e-1, f"mismatch vs reference, max_err={max_err}"

    print("KERNEL_OK")
</pallas_src>

<mosaic_0001>
module attributes {stable_mosaic.version = 11 : i64} {
  func.func @basic_block_kernel(%arg0: i32, %arg1: memref<1x8x128xbf16, #tpu.memory_space<vmem>>, %arg2: memref<512x128xbf16, #tpu.memory_space<vmem>>, %arg3: memref<512x128xbf16, #tpu.memory_space<vmem>>, %arg4: memref<2x128xf32, #tpu.memory_space<vmem>>, %arg5: memref<1x8x128xbf16, #tpu.memory_space<vmem>>, %arg6: memref<1x9x256xbf16, #tpu.memory_space<vmem>>) attributes {dimension_semantics = [#tpu.dimension_semantics<parallel>], iteration_bounds = array<i64: 2>, scalar_prefetch = 0 : i64, scratch_operands = 1 : i64, tpu.core_type = #tpu.core_type<tc>, window_params = [{transform_indices = @transform_0, window_bounds = array<i64: 1, 8, 128>}, {pipeline_mode = #tpu.pipeline_mode<synchronous>, transform_indices = @transform_1, window_bounds = array<i64: 512, 128>}, {pipeline_mode = #tpu.pipeline_mode<synchronous>, transform_indices = @transform_2, window_bounds = array<i64: 512, 128>}, {pipeline_mode = #tpu.pipeline_mode<synchronous>, transform_indices = @transform_3, window_bounds = array<i64: 2, 128>}, {transform_indices = @transform_4, window_bounds = array<i64: 1, 8, 128>}]} {
    %cst = arith.constant 0.000000e+00 : bf16
    %0 = vector.broadcast %cst : bf16 to vector<1x9x256xbf16>
    %c0 = arith.constant 0 : index
    %c0_0 = arith.constant 0 : index
    %c0_1 = arith.constant 0 : index
    %1 = vector.load %arg6[%c0, %c0_0, %c0_1] : memref<1x9x256xbf16, #tpu.memory_space<vmem>>, vector<1x9x256xbf16>
    tpu.vector_store %arg6[%c0, %c0_0, %c0_1], %0 {strides = array<i32>} : memref<1x9x256xbf16, #tpu.memory_space<vmem>>, vector<1x9x256xbf16>,
    %c0_2 = arith.constant 0 : index
    %c0_3 = arith.constant 0 : index
    %c0_4 = arith.constant 0 : index
    %2 = vector.load %arg1[%c0_2, %c0_3, %c0_4] : memref<1x8x128xbf16, #tpu.memory_space<vmem>>, vector<1x8x128xbf16>
    %3 = vector.extract_strided_slice %2 {offsets = [0, 0, 0], sizes = [1, 8, 64], strides = [1, 1, 1]} : vector<1x8x128xbf16> to vector<1x8x64xbf16>
    %c0_5 = arith.constant 0 : index
    %c0_6 = arith.constant 0 : index
    %c128 = arith.constant 128 : index
    %4 = vector.load %arg6[%c0_5, %c0_6, %c128] : memref<1x9x256xbf16, #tpu.memory_space<vmem>>, vector<1x8x64xbf16>
    tpu.vector_store %arg6[%c0_5, %c0_6, %c128], %3 {strides = array<i32>} : memref<1x9x256xbf16, #tpu.memory_space<vmem>>, vector<1x8x64xbf16>,
    %5 = vector.extract_strided_slice %2 {offsets = [0, 0, 64], sizes = [1, 8, 64], strides = [1, 1, 1]} : vector<1x8x128xbf16> to vector<1x8x64xbf16>
    %c0_7 = arith.constant 0 : index
    %c1 = arith.constant 1 : index
    %c0_8 = arith.constant 0 : index
    %6 = vector.load %arg6[%c0_7, %c1, %c0_8] : memref<1x9x256xbf16, #tpu.memory_space<vmem>>, vector<1x8x64xbf16>
    tpu.vector_store %arg6[%c0_7, %c1, %c0_8], %5 {strides = array<i32>} : memref<1x9x256xbf16, #tpu.memory_space<vmem>>, vector<1x8x64xbf16>,
    %c0_9 = arith.constant 0 : index
    %c0_10 = arith.constant 0 : index
    %7 = vector.load %arg4[%c0_9, %c0_10] : memref<2x128xf32, #tpu.memory_space<vmem>>, vector<1x128xf32>
    %c0_11 = arith.constant 0 : index
    %c0_12 = arith.constant 0 : index
    %c0_13 = arith.constant 0 : index
    %8 = vector.load %arg6[%c0_11, %c0_12, %c0_13] : memref<1x9x256xbf16, #tpu.memory_space<vmem>>, vector<1x8x256xbf16>
    %c0_14 = arith.constant 0 : index
    %c1_15 = arith.constant 1 : index
    %c0_16 = arith.constant 0 : index
    %9 = vector.load %arg6[%c0_14, %c1_15, %c0_16] : memref<1x9x256xbf16, #tpu.memory_space<vmem>>, vector<1x8x256xbf16>
    %10 = tpu.concatenate %8, %9 in 2 : vector<1x8x256xbf16>, vector<1x8x256xbf16> -> vector<1x8x512xbf16>
    %11 = vector.shape_cast %10 : vector<1x8x512xbf16> to vector<8x512xbf16>
    %c0_17 = arith.constant 0 : index
    %c0_18 = arith.constant 0 : index
    %12 = vector.load %arg2[%c0_17, %c0_18] : memref<512x128xbf16, #tpu.memory_space<vmem>>, vector<512x128xbf16>
    %cst_19 = arith.constant dense<0.000000e+00> : vector<8x128xf32>
    %13 = tpu.matmul %11, %12, %cst_19 {dimension_numbers = #tpu.dot_dimension_numbers<[1], [0], [0], [1], [0, 0, 1, 1], [], []>} : vector<8x512xbf16>, vector<512x128xbf16>, vector<8x128xf32> -> vector<8x128xf32>
    %14 = vector.broadcast %7 : vector<1x128xf32> to vector<8x128xf32>
    %15 = arith.addf %13, %14 : vector<8x128xf32>
    %cst_20 = arith.constant 0.000000e+00 : f32
    %16 = vector.broadcast %cst_20 : f32 to vector<8x128xf32>
    %17 = arith.maximumf %15, %16 : vector<8x128xf32>
    %18 = arith.truncf %17 : vector<8x128xf32> to vector<8x128xbf16>
    %19 = vector.shape_cast %18 : vector<8x128xbf16> to vector<1x8x128xbf16>
    %20 = vector.extract_strided_slice %19 {offsets = [0, 0, 0], sizes = [1, 8, 64], strides = [1, 1, 1]} : vector<1x8x128xbf16> to vector<1x8x64xbf16>
    %c0_21 = arith.constant 0 : index
    %c0_22 = arith.constant 0 : index
    %c128_23 = arith.constant 128 : index
    %21 = vector.load %arg6[%c0_21, %c0_22, %c128_23] : memref<1x9x256xbf16, #tpu.memory_space<vmem>>, vector<1x8x64xbf16>
    tpu.vector_store %arg6[%c0_21, %c0_22, %c128_23], %20 {strides = array<i32>} : memref<1x9x256xbf16, #tpu.memory_space<vmem>>, vector<1x8x64xbf16>,
    %22 = vector.extract_strided_slice %19 {offsets = [0, 0, 64], sizes = [1, 8, 64], strides = [1, 1, 1]} : vector<1x8x128xbf16> to vector<1x8x64xbf16>
    %c0_24 = arith.constant 0 : index
    %c1_25 = arith.constant 1 : index
    %c0_26 = arith.constant 0 : index
    %23 = vector.load %arg6[%c0_24, %c1_25, %c0_26] : memref<1x9x256xbf16, #tpu.memory_space<vmem>>, vector<1x8x64xbf16>
    tpu.vector_store %arg6[%c0_24, %c1_25, %c0_26], %22 {strides = array<i32>} : memref<1x9x256xbf16, #tpu.memory_space<vmem>>, vector<1x8x64xbf16>,
    %c1_27 = arith.constant 1 : index
    %c0_28 = arith.constant 0 : index
    %24 = vector.load %arg4[%c1_27, %c0_28] : memref<2x128xf32, #tpu.memory_space<vmem>>, vector<1x128xf32>
    %c0_29 = arith.constant 0 : index
    %c0_30 = arith.constant 0 : index
    %c0_31 = arith.constant 0 : index
    %25 = vector.load %arg6[%c0_29, %c0_30, %c0_31] : memref<1x9x256xbf16, #tpu.memory_space<vmem>>, vector<1x8x256xbf16>
    %c0_32 = arith.constant 0 : index
    %c1_33 = arith.constant 1 : index
    %c0_34 = arith.constant 0 : index
    %26 = vector.load %arg6[%c0_32, %c1_33, %c0_34] : memref<1x9x256xbf16, #tpu.memory_space<vmem>>, vector<1x8x256xbf16>
    %27 = tpu.concatenate %25, %26 in 2 : vector<1x8x256xbf16>, vector<1x8x256xbf16> -> vector<1x8x512xbf16>
    %28 = vector.shape_cast %27 : vector<1x8x512xbf16> to vector<8x512xbf16>
    %c0_35 = arith.constant 0 : index
    %c0_36 = arith.constant 0 : index
    %29 = vector.load %arg3[%c0_35, %c0_36] : memref<512x128xbf16, #tpu.memory_space<vmem>>, vector<512x128xbf16>
    %cst_37 = arith.constant dense<0.000000e+00> : vector<8x128xf32>
    %30 = tpu.matmul %28, %29, %cst_37 {dimension_numbers = #tpu.dot_dimension_numbers<[1], [0], [0], [1], [0, 0, 1, 1], [], []>} : vector<8x512xbf16>, vector<512x128xbf16>, vector<8x128xf32> -> vector<8x128xf32>
    %31 = vector.broadcast %24 : vector<1x128xf32> to vector<8x128xf32>
    %32 = arith.addf %30, %31 : vector<8x128xf32>
    %33 = vector.shape_cast %2 : vector<1x8x128xbf16> to vector<8x128xbf16>
    %34 = arith.extf %33 : vector<8x128xbf16> to vector<8x128xf32>
    %35 = arith.addf %32, %34 : vector<8x128xf32>
    %cst_38 = arith.constant 0.000000e+00 : f32
    %36 = vector.broadcast %cst_38 : f32 to vector<8x128xf32>
    %37 = arith.maximumf %35, %36 : vector<8x128xf32>
    %38 = arith.truncf %37 : vector<8x128xf32> to vector<8x128xbf16>
    %39 = vector.shape_cast %38 : vector<8x128xbf16> to vector<1x8x128xbf16>
    %c0_39 = arith.constant 0 : index
    %c0_40 = arith.constant 0 : index
    %c0_41 = arith.constant 0 : index
    %40 = vector.load %arg5[%c0_39, %c0_40, %c0_41] : memref<1x8x128xbf16, #tpu.memory_space<vmem>>, vector<1x8x128xbf16>
    tpu.vector_store %arg5[%c0_39, %c0_40, %c0_41], %39 {strides = array<i32>} : memref<1x8x128xbf16, #tpu.memory_space<vmem>>, vector<1x8x128xbf16>,
    return
  }
  func.func @transform_0(%arg0: i32) -> (i32, i32, i32) {
    %c0_i32 = arith.constant 0 : i32
    %c0_i32_0 = arith.constant 0 : i32
    %c0_i32_1 = arith.constant 0 : i32
    return %arg0, %c0_i32, %c0_i32_0 : i32, i32, i32
  }
  func.func @transform_1(%arg0: i32) -> (i32, i32) {
    %c0_i32 = arith.constant 0 : i32
    %c0_i32_0 = arith.constant 0 : i32
    %c0_i32_1 = arith.constant 0 : i32
    return %c0_i32, %c0_i32_0 : i32, i32
  }
  func.func @transform_2(%arg0: i32) -> (i32, i32) {
    %c0_i32 = arith.constant 0 : i32
    %c0_i32_0 = arith.constant 0 : i32
    %c0_i32_1 = arith.constant 0 : i32
    return %c0_i32, %c0_i32_0 : i32, i32
  }
  func.func @transform_3(%arg0: i32) -> (i32, i32) {
    %c0_i32 = arith.constant 0 : i32
    %c0_i32_0 = arith.constant 0 : i32
    %c0_i32_1 = arith.constant 0 : i32
    return %c0_i32, %c0_i32_0 : i32, i32
  }
  func.func @transform_4(%arg0: i32) -> (i32, i32, i32) {
    %c0_i32 = arith.constant 0 : i32
    %c0_i32_0 = arith.constant 0 : i32
    %c0_i32_1 = arith.constant 0 : i32
    return %arg0, %c0_i32, %c0_i32_0 : i32, i32, i32
  }
}

</mosaic_0001>

<bundles_post_ra>
// kernel: tpu_custom_call.1
= control target key start
LH: loop header
LB: loop body
LE: loop exit
PB: predicated region body
PF: predicated region fallthrough
CT: control target
= control target key end

     0   :  { %9 = vsyncpa [#allocation4], 0  ;;  %s1889_s0 = inlined_call_operand.hbm [shape: bf16[2,8,128], index: 0, kind: input, shape index: {}]   ;;  %s1890_s1 = inlined_call_operand.hbm [shape: bf16[512,128], index: 1, kind: input, shape index: {}]   ;;  %s1891_s2 = inlined_call_operand.hbm [shape: bf16[512,128], index: 2, kind: input, shape index: {}]   ;;  %s1892_s3 = inlined_call_operand.vmem [shape: f32[2,128], index: 3, kind: input, shape index: {}]   ;;  %s1893_s4 = inlined_call_operand.hbm [shape: bf16[2,8,128], index: 4, kind: output, shape index: {}]  }
   0x1   :  { %11 = vsyncpa [#allocation4 + $0x1], 0 }
   0x2   :  { %12 = vsyncpa [#allocation7], 0 }
   0x3   :  { %13 = vsyncpa [#allocation5], 0 }
   0x4   :  { %15 = vsyncpa [#allocation5 + $0x1], 0  ;;  %s1703_s15 = smov 0   ;;  %s1705_s16 = smov 0  }
   0x5   :  { %s1707_s17 = smov 0   ;;  %s1709_s18 = smov 0  }
   0x6 LB: > { %s152_s21 = sshll.u32 %s1890_s1, 4  ;;  %s1727_s22 = sadd.s32 4294967295, %s1670_s18   ;;  %s1670_s18 = sphi %s1709_s18, %s1908_s18   ;;  %s1666_s17 = sphi %s1707_s17, %s1907_s17   ;;  %s1662_s16 = sphi %s1705_s16, %s1906_s16   ;;  %s1658_s15 = sphi %s1703_s15, %s1905_s15   ;;  %s153_s21 = int_to_ptr.hbm [resolvable:$true] %s152_s21 }
   0x7   : > { %p1102_p0 = scmp.ge.s32.totalorder %s1670_s18, 1  ;;  %p42_p1 = scmp.eq.s32.totalorder %s1727_s22, 0 }
   0x8   : > { %p141_p2 = scmp.lt.s32.totalorder %s1670_s18, 3  ;;  %s1672_s24 = smov [#allocation6]  }
   0x9   : > { %s154_s25 = sshll.u32 %s1672_s24, 4  ;;  %s166_s28 = sshll.u32 %s1891_s2, 4  ;;  %s155_s25 = int_to_ptr.vmem [resolvable:$true] %s154_s25  ;;  %s167_s28 = int_to_ptr.hbm [resolvable:$true] %s166_s28 }
   0xa   : > { %p1732_p3 = pnand %p1102_p0, %p141_p2  ;;  %s1673_s29 = smov [#allocation8]  }
   0xb   : > { %s168_s30 = sshll.u32 %s1673_s29, 4  ;;  %s1674_s5 = smov 64   ;;  %s169_s30 = int_to_ptr.vmem [resolvable:$true] %s168_s30 }
   0xc   : > { %p1449_p4 = pneg %p1732_p3  ;;  %s1675_s6 = smov 4  }
   0xd   : > { %s1101_s7 = sadd.s32 4294967294, %s1670_s18   ;;  %s1746_s8 = sadd.s32 1, %s1670_s18  }
   0xe   : > { %p1450_p6 = pnand %p1449_p4, %p42_p1  ;;  %s25_s9 = ssub.s32 %s1670_s18, %s1746_s8 }
   0xf   : > { %s28_s10 = sadd.s32 1, %s1666_s17  ;;  %p26_p7 = scmp.eq.s32.totalorder %s25_s9, 0 }
  0x10   : > { %1452 = dma.hbm_to_vmem [thread:$0]  (!%p1450_p6), %s153_s21, 4096, %s155_s25, [#allocation7], %s1674_s5, %s1674_s5, %s1675_s6  }
  0x11   : > { %1455 = dma.hbm_to_vmem [thread:$0]  (!%p1450_p6), %s167_s28, 4096, %s169_s30, [#allocation7], %s1674_s5, %s1674_s5, %s1675_s6  }
  0x12   : > { %p35_p8 = scmp.ne.s32.totalorder %s1666_s17, %s1662_s16  ;;  %p36_p9 = scmp.eq.s32.totalorder %s1670_s18, 0 }
  0x13   : > { %p41_p10 = scmp.ne.s32.totalorder %s1662_s16, %s1658_s15  ;;  %p128_p13 = scmp.eq.s32.totalorder %s1727_s22, 1 }
  0x14   : > { %s1757_s11 = scalar_select %p26_p7, %s1666_s17, %s28_s10  }
  0x15   : > { %p1759_p11 = por %p36_p9, %p35_p8  ;;  %p1765_p12 = por %p42_p1, %p41_p10 }
  0x16   : > { %p134_p0 = scmp.eq.s32.totalorder %s1101_s7, 1  ;;  %p1466_p2 = scmp.lt.s32.totalorder %s1670_s18, 2 }
  0x17   : > { %s185_s14 = sand.u32 1, %s1666_s17   ;;  %p1772_p4 = por %p128_p13, %p35_p8 }
  0x18   : > { %p1776_p6 = por %p134_p0, %p41_p10  ;;  %s1106_s21 = sshll.u32 %s185_s14, 2 }
  0x19   : > { %s1107_s24 = sshll.u32 %s1670_s18, 2  ;;  %s189_s28 = scalar_lea.vmem [#allocation3], %s1106_s21 }
  0x1a   : > { %s193_s27 = scalar_lea.hbm %s1889_s0, %s1107_s24  ;;  %s197_s29 = sshll.u32 %s189_s28, 4  ;;  %s198_s29 = int_to_ptr.vmem [resolvable:$true] %s197_s29 }
  0x1b   : > { %s195_s30 = sshll.u32 %s193_s27, 4  ;;  %p1786_p7 = pnand %p1466_p2, %p1759_p11  ;;  %s196_s30 = int_to_ptr.hbm [resolvable:$true] %s195_s30 }
  0x1c   : > { %s186_s6 = scalar_lea.sflag [#allocation4], %s185_s14  ;;  %s1570_s7 = sshra.s32 %s196_s30, 4  ;;  %s1571_s7 = int_to_ptr.hbm [resolvable:$true] %s1570_s7 }
  0x1d   : > { %s1572_s9 = scalar_lea.hbm %s1571_s7, 4  ;;  %p1574_p9 = pneg %p1786_p7 }
  0x1e   : > { %p1573_p8 = scmp.ne.s32.totalorder %s1571_s7, %s1572_s9  ;;  %s1577_s24 = scalar_lea.hbm %s1889_s0, 8 }
  0x1f   : > { %p1578_p11 = scmp.lt.s32.totalorder %s1571_s7, %s1889_s0  ;;  %p1579_p0 = scmp.lt.s32.totalorder %s1577_s24, %s1572_s9 }
  0x20   : > { %p1575_p10 = pnand %p1574_p9, %p1573_p8 }
  0x21   : > { %p1580_p2 = por %p1579_p0, %p1578_p11 }
  0x22   : > { %p1576_p13 = pneg %p1575_p10 }
  0x24   : > { %p1581_p5 = pnand %p1580_p2, %p1576_p13 }
  0x26   : > { %1584 = shalt.err (!%p1581_p5)
}
  0x27   : > { %1459 = dma.hbm_to_vmem [thread:$0]  (!%p1786_p7), %s196_s30, 64, %s198_s29, %s186_s6  }
  0x28   : > { %206 = sbr.rel (%p1732_p3) target bundleno = 630 (0x276), region = 36  ;;  %s1803_s14 = sand.u32 (!%p1732_p3), 1, %s1662_s16  }
  0x29   : > { %s1109_s26 = sshll.u32 (!%p1732_p3), %s1803_s14, 2  ;;  %s209_s27 = scalar_lea.sflag (!%p1732_p3), [#allocation4], %s1803_s14 }
  0x2a   : > { %s212_s28 = scalar_lea.vmem (!%p1732_p3), [#allocation3], %s1109_s26 }
  0x2d   : > { %1645 = dma.done.wait (%p1765_p12), %s209_s27, 64  }
  0x2e   : > { %1647 = vsyncadd (%p1765_p12), %s209_s27, 4294967232 }
  0x2f   : > { %1649 = dma.done.wait (%p42_p1), [#allocation7], 8192  }
  0x30   : > { %1651 = vsyncadd (%p42_p1), [#allocation7], 4294959104  ;;  %v1676_v0 = vmov 0   ;;  %v1817_v1 = vld [vmem:[%s212_s28] sm:$0xf]  ;;  %vm261_vm0 = vcmask 519168  }
  0x31   : > { %249 = vst [vmem:[#allocation2] sm:$0xff] %v1676_v0  ;;  %v1380_v2 = vld [vmem:[#allocation6 + $0x38] sm:$0xff]  ;;  %v264_v4 = vshrl.u32 %v1817_v1, 16  ;;  %v267_v5 = vshll.u32 %v1817_v1, 16  ;;  %v1379_v6 = vld [vmem:[#allocation6 + $0x30] sm:$0xff]  ;;  %v1378_v12 = vld [vmem:[#allocation6 + $0x28] sm:$0xff] }
  0x32   : > { %v1388_v3 = vld [vmem:[#allocation6 + $0x78] sm:$0xff]  ;;  %576 = vmatpush.bf16.msra.mxu0 %v1380_v2  ;;  %v1387_v7 = vld [vmem:[#allocation6 + $0x70] sm:$0xff]  ;;  %262 = vst.msk [vmem:[#allocation2 + $0x4] sm:$0xf] %vm261_vm0, %v1817_v1  ;;  %v1386_v13 = vld [vmem:[#allocation6 + $0x68] sm:$0xff]  ;;  %s1677_s23 = smov 64  }
  0x33   : > { %589 = vmatpush.bf16.msra.mxu1 %v1388_v3  ;;  %v266_v8 = vrot.slane %v264_v4, 7  ;;  %v1396_v9 = vld [vmem:[#allocation6 + $0xb8] sm:$0xff]  ;;  %v1377_v14 = vld [vmem:[#allocation6 + $0x20] sm:$0xff]  ;;  %vm250_vm1 = vcmask 1040384   ;;  %vm251_vm2 = vsmask.f32 256 }
  0x34   : > { %v1404_v10 = vld [vmem:[#allocation6 + $0xf8] sm:$0xff]  ;;  %602 = vmatpush.bf16.msra.mxu2 %v1396_v9  ;;  %v1385_v15 = vld [vmem:[#allocation6 + $0x60] sm:$0xff]  ;;  %vm253_vm3 = vcmask 1044484   ;;  %vm254_vm4 = vsmask.f32 4352  ;;  %vm252_vm5 = vmand %vm250_vm1, %vm251_vm2  ;;  %vm283_vm10 = vcmask 516096  }
  0x35   : > { %v269_v11 = vor.u32 %v267_v5, %v266_v8  ;;  %615 = vmatpush.bf16.msra.mxu3 %v1404_v10  ;;  %v270_v16 = vrot.slane %v266_v8, 4  ;;  %v1376_v17 = vld [vmem:[#allocation6 + $0x18] sm:$0xff]  ;;  %v1395_v19 = vld [vmem:[#allocation6 + $0xb0] sm:$0xff]  ;;  %vm255_vm6 = vmand %vm253_vm3, %vm254_vm4  ;;  %vm278_vm8 = vsmask.f32 7938  ;;  %s1370_s6 = sshll.u32 %s1727_s22, 2 }
  0x36   : > { %577 = vmatpush.bf16.msra.mxu0 %v1379_v6  ;;  %v1384_v18 = vld [vmem:[#allocation6 + $0x58] sm:$0xff]  ;;  %v1403_v20 = vld [vmem:[#allocation6 + $0xf0] sm:$0xff]  ;;  %vm256_vm7 = vmor %vm255_vm6, %vm252_vm5  ;;  %s1007_s10 = scalar_lea.hbm %s1893_s4, %s1370_s6  ;;  %s247_s21 = scalar_lea.vmem [#allocation9], %s1109_s26 }
  0x37   : > { %590 = vmatpush.bf16.msra.mxu1 %v1387_v7  ;;  %271 = vrot.lane.b32.xlu0 %v269_v11, %s1677_s23  ;;  %v257_v21 = vld [vmem:[#allocation2 + $0x8] sm:$0x11]  ;;  %v1394_v25 = vld [vmem:[#allocation6 + $0xa8] sm:$0xff]  ;;  %v1393_v29 = vld [vmem:[#allocation6 + $0xa0] sm:$0xff]  ;;  %s1009_s24 = sshll.u32 %s247_s21, 4  ;;  %s1011_s25 = sshll.u32 %s1007_s10, 4  ;;  %s1010_s24 = int_to_ptr.vmem [resolvable:$true] %s1009_s24  ;;  %s1012_s25 = int_to_ptr.hbm [resolvable:$true] %s1011_s25 }
  0x38   : > { %603 = vmatpush.bf16.msra.mxu2 %v1395_v19  ;;  %v1375_v22 = vld [vmem:[#allocation6 + $0x10] sm:$0xff]  ;;  %v258_v24 = vsel %vm256_vm7, 0, %v257_v21  ;;  %v1402_v26 = vld [vmem:[#allocation6 + $0xe8] sm:$0xff]  ;;  %v1401_v30 = vld [vmem:[#allocation6 + $0xe0] sm:$0xff]  ;;  %s997_s22 = scalar_lea.sflag [#allocation5], %s1803_s14  ;;  %s1614_s12 = sshra.s32 %s1012_s25, 4  ;;  %s1615_s12 = int_to_ptr.hbm [resolvable:$true] %s1614_s12 }
  0x39   : > { %616 = vmatpush.bf16.msra.mxu3 %v1403_v20  ;;  %v1383_v23 = vld [vmem:[#allocation6 + $0x50] sm:$0xff]  ;;  %259 = vst [vmem:[#allocation2 + $0x8] sm:$0x11] %v258_v24  ;;  %v1374_v27 = vld [vmem:[#allocation6 + $0x8] sm:$0xff]  ;;  %v1373_v31 = vld [vmem:[#allocation6] sm:$0xff]  ;;  %s1616_s27 = scalar_lea.hbm %s1615_s12, 4  ;;  %p1621_p12 = scmp.lt.s32.totalorder %s1615_s12, %s1893_s4 }
  0x3a   : > { %578 = vmatpush.bf16.msra.mxu0 %v1378_v12  ;;  %v1382_v28 = vld [vmem:[#allocation6 + $0x48] sm:$0xff]  ;;  %v1381_v32 = vld [vmem:[#allocation6 + $0x40] sm:$0xff]  ;;  %v1392_v33 = vld [vmem:[#allocation6 + $0x98] sm:$0xff]  ;;  %p1617_p1 = scmp.ne.s32.totalorder %s1615_s12, %s1616_s27  ;;  %s1620_s26 = scalar_lea.hbm %s1893_s4, 8 }
  0x3b   : > { %591 = vmatpush.bf16.msra.mxu1 %v1386_v13  ;;  %v1400_v34 = vld [vmem:[#allocation6 + $0xd8] sm:$0xff]  ;;  %v1391_v35 = vld [vmem:[#allocation6 + $0x90] sm:$0xff]  ;;  %v1390_v37 = vld [vmem:[#allocation6 + $0x88] sm:$0xff]  ;;  %p1622_p7 = scmp.lt.s32.totalorder %s1620_s26, %s1616_s27 }
  0x3c   : > { %604 = vmatpush.bf16.msra.mxu2 %v1394_v25  ;;  %v1399_v36 = vld [vmem:[#allocation6 + $0xd0] sm:$0xff]  ;;  %v1398_v38 = vld [vmem:[#allocation6 + $0xc8] sm:$0xff]  ;;  %v1389_v39 = vld [vmem:[#allocation6 + $0x80] sm:$0xff]  ;;  %p1618_p3 = pnand %p1617_p1, %p1772_p4 }
  0x3d   : > { %617 = vmatpush.bf16.msra.mxu3 %v1402_v26  ;;  %v1397_v40 = vld [vmem:[#allocation6 + $0xc0] sm:$0xff]  ;;  %vm1827_vm9 = vmand %vm261_vm0, %vm278_vm8  ;;  %v280_v42 = vld [vmem:[#allocation2] sm:$0xf]  ;;  %p1623_p8 = por %p1622_p7, %p1621_p12 }
  0x3e   : > { %579 = vmatpush.bf16.msra.mxu0 %v1377_v14  ;;  %vm1834_vm11 = vmand %vm283_vm10, %vm251_vm2  ;;  %v1508_v8 = vld [vmem:[%s1892_s3] ss:$0 sm:$0xff]  ;;  %v1412_v9 = vld [vmem:[#allocation8 + $0x38] sm:$0xff]  ;;  %p1619_p5 = pneg %p1618_p3 }
  0x3f   : > { %592 = vmatpush.bf16.msra.mxu1 %v1385_v15  ;;  %273 = vrot.lane.b32.xlu0 %v270_v16, %s1677_s23  ;;  %v1420_v10 = vld [vmem:[#allocation8 + $0x78] sm:$0xff]  ;;  %v1411_v11 = vld [vmem:[#allocation8 + $0x30] sm:$0xff]  ;;  %v1410_v16 = vld [vmem:[#allocation8 + $0x28] sm:$0xff] }
  0x40   : > { %605 = vmatpush.bf16.msra.mxu2 %v1393_v29  ;;  %v285_v46 = vld [vmem:[#allocation2 + $0x8] sm:$0x1]  ;;  %v1428_v13 = vld [vmem:[#allocation8 + $0xb8] sm:$0xff]  ;;  %p1624_p9 = pnand %p1623_p8, %p1619_p5 }
  0x41   : > { %618 = vmatpush.bf16.msra.mxu3 %v1401_v30  ;;  %v1419_v12 = vld [vmem:[#allocation8 + $0x70] sm:$0xff]  ;;  %v1436_v14 = vld [vmem:[#allocation8 + $0xf8] sm:$0xff] }
  0x42   : > { %580 = vmatpush.bf16.msra.mxu0 %v1376_v17  ;;  %v1418_v17 = vld [vmem:[#allocation8 + $0x68] sm:$0xff]  ;;  %v1408_v26 = vld [vmem:[#allocation8 + $0x18] sm:$0xff] }
  0x43   : > { %593 = vmatpush.bf16.msra.mxu1 %v1384_v18 }
  0x44   : > { %606 = vmatpush.bf16.msra.mxu2 %v1392_v33 }
  0x45   : > { %619 = vmatpush.bf16.msra.mxu3 %v1400_v34 }
  0x46   : > { %581 = vmatpush.bf16.msra.mxu0 %v1375_v22  ;;  %v1409_v22 = vld [vmem:[#allocation8 + $0x20] sm:$0xff] }
  0x47   : > { %594 = vmatpush.bf16.msra.mxu1 %v1383_v23  ;;  %v1417_v23 = vld [vmem:[#allocation8 + $0x60] sm:$0xff] }
  0x48   : > { %607 = vmatpush.bf16.msra.mxu2 %v1391_v35 }
  0x49   : > { %620 = vmatpush.bf16.msra.mxu3 %v1399_v36  ;;  %v1427_v36 = vld [vmem:[#allocation8 + $0xb0] sm:$0xff] }
  0x4a   : > { %582 = vmatpush.bf16.msra.mxu0 %v1374_v27  ;;  %v1416_v27 = vld [vmem:[#allocation8 + $0x58] sm:$0xff] }
  0x4b   : > { %595 = vmatpush.bf16.msra.mxu1 %v1382_v28 }
  0x4c   : > { %608 = vmatpush.bf16.msra.mxu2 %v1390_v37  ;;  %v1435_v37 = vld [vmem:[#allocation8 + $0xf0] sm:$0xff] }
  0x4d   : > { %621 = vmatpush.bf16.msra.mxu3 %v1398_v38  ;;  %v1407_v38 = vld [vmem:[#allocation8 + $0x10] sm:$0xff] }
  0x4e   : > { %583 = vmatpush.bf16.msra.mxu0 %v1373_v31 }
  0x4f   : > { %596 = vmatpush.bf16.msra.mxu1 %v1381_v32 }
  0x50   : > { %609 = vmatpush.bf16.msra.mxu2 %v1389_v39  ;;  %v1415_v39 = vld [vmem:[#allocation8 + $0x50] sm:$0xff] }
  0x51   : > { %622 = vmatpush.bf16.msra.mxu3 %v1397_v40  ;;  %v1426_v40 = vld [vmem:[#allocation8 + $0xa8] sm:$0xff] }
  0x52   : > { %939 = vmatpush.bf16.msrb.mxu0 %v1412_v9 }
  0x53   : > { %952 = vmatpush.bf16.msrb.mxu1 %v1420_v10 }
  0x54   : > { %965 = vmatpush.bf16.msrb.mxu2 %v1428_v13 }
  0x55   : > { %978 = vmatpush.bf16.msrb.mxu3 %v1436_v14 }
  0x56   : > { %940 = vmatpush.bf16.msrb.mxu0 %v1411_v11 }
  0x57   : > { %953 = vmatpush.bf16.msrb.mxu1 %v1419_v12 }
  0x58   : > { %966 = vmatpush.bf16.msrb.mxu2 %v1427_v36 }
  0x59   : > { %979 = vmatpush.bf16.msrb.mxu3 %v1435_v37 }
  0x5a   : > { %941 = vmatpush.bf16.msrb.mxu0 %v1410_v16 }
  0x5b   : > { %954 = vmatpush.bf16.msrb.mxu1 %v1418_v17 }
  0x5c   : > { %967 = vmatpush.bf16.msrb.mxu2 %v1426_v40 }
  0x5e   : > { %942 = vmatpush.bf16.msrb.mxu0 %v1409_v22 }
  0x5f   : > { %955 = vmatpush.bf16.msrb.mxu1 %v1417_v23 }
  0x62   : > { %943 = vmatpush.bf16.msrb.mxu0 %v1408_v26 }
  0x63   : > { %956 = vmatpush.bf16.msrb.mxu1 %v1416_v27  ;;  %v991_v27 = vunpack.c.l.bf16 %v1817_v1 }
  0x66   : > { %944 = vmatpush.bf16.msrb.mxu0 %v1407_v38 }
  0x67   : > { %957 = vmatpush.bf16.msrb.mxu1 %v1415_v39 }
  0xa9   : > { %v272_v43 = vpop.permute.xlu0 %271 }
  0xaa   : > { %v281_v44 = vsel %vm1827_vm9, %v272_v43, %v280_v42  ;;  %v1434_v42 = vld [vmem:[#allocation8 + $0xe8] sm:$0xff] }
  0xab   : > { %282 = vst [vmem:[#allocation2] sm:$0xf] %v281_v44  ;;  %v1406_v43 = vld [vmem:[#allocation8 + $0x8] sm:$0xff]  ;;  %980 = vmatpush.bf16.msrb.mxu3 %v1434_v42 }
  0xac   : > { %v1414_v44 = vld [vmem:[#allocation8 + $0x48] sm:$0xff]  ;;  %945 = vmatpush.bf16.msrb.mxu0 %v1406_v43 }
  0xad   : > { %958 = vmatpush.bf16.msrb.mxu1 %v1414_v44 }
  0xb1   : > { %v274_v47 = vpop.permute.xlu0 %273 }
  0xb2   : > { %v286_v48 = vsel %vm1834_vm11, %v274_v47, %v285_v46  ;;  %v289_v49 = vld [vmem:[#allocation2] sm:$0xff]  ;;  %v1425_v46 = vld [vmem:[#allocation8 + $0xa0] sm:$0xff] }
  0xb3   : > { %287 = vst [vmem:[#allocation2 + $0x8] sm:$0x1] %v286_v48  ;;  %v292_v50 = vunpack.c.l.b16 %v289_v49  ;;  %v293_v51 = vunpack.c.h.b16 %v289_v49  ;;  %v1433_v47 = vld [vmem:[#allocation8 + $0xe0] sm:$0xff]  ;;  %968 = vmatpush.bf16.msrb.mxu2 %v1425_v46 }
  0xb4   : > { %981 = vmatpush.bf16.msrb.mxu3 %v1433_v47  ;;  %v1405_v48 = vld [vmem:[#allocation8] sm:$0xff] }
  0xb5   : > { %v294_v52 = vpack.c.b16 %v292_v50, %v292_v50  ;;  %v295_v53 = vpack.c.b16 %v293_v51, %v293_v51  ;;  %v1413_v49 = vld [vmem:[#allocation8 + $0x40] sm:$0xff]  ;;  %946 = vmatpush.bf16.msrb.mxu0 %v1405_v48 }
  0xb6   : > { %959 = vmatpush.bf16.msrb.mxu1 %v1413_v49 }
  0xb7   : > { %584 = vmatmul.bf16.vlgmr.msra.gmra.mxu0 %v294_v52  ;;  %597 = vmatmul.bf16.vlgmr.msra.gmra.mxu1 %v295_v53  ;;  %v1423_v52 = vld [vmem:[#allocation8 + $0x90] sm:$0xff] }
  0xb8   : > { %v1431_v53 = vld [vmem:[#allocation8 + $0xd0] sm:$0xff] }
  0xba   : > { %v290_v54 = vld [vmem:[#allocation2 + $0x8] sm:$0x11] }
  0xbb   : > { %v299_v55 = vunpack.c.l.b16 %v290_v54  ;;  %v300_v56 = vunpack.c.h.b16 %v290_v54  ;;  %v1422_v54 = vld [vmem:[#allocation8 + $0x88] sm:$0xff] }
  0xbd   : > { %v301_v57 = vpack.c.b16 %v299_v55, %v292_v50  ;;  %v302_v58 = vpack.c.b16 %v300_v56, %v293_v51  ;;  %v1424_v50 = vld [vmem:[#allocation8 + $0x98] sm:$0xff]  ;;  %v1430_v55 = vld [vmem:[#allocation8 + $0xc8] sm:$0xff]  ;;  %v1421_v56 = vld [vmem:[#allocation8 + $0x80] sm:$0xff] }
  0xbe   : > { %v1432_v51 = vld [vmem:[#allocation8 + $0xd8] sm:$0xff]  ;;  %969 = vmatpush.bf16.msrb.mxu2 %v1424_v50 }
  0xbf   : > { %v306_v59 = vshll.u32 %v301_v57, 16  ;;  %v313_v60 = vshll.u32 %v302_v58, 16  ;;  %v304_v61 = vshrl.u32 %v301_v57, 16  ;;  %v311_v63 = vshrl.u32 %v302_v58, 16  ;;  %982 = vmatpush.bf16.msrb.mxu3 %v1432_v51  ;;  %v1429_v57 = vld [vmem:[#allocation8 + $0xc0] sm:$0xff] }
  0xc0   : > { %v645_v58 = vld [vmem:[#allocation2] sm:$0xf] }
  0xc1   : > { %v308_v62 = vrot.slane %v306_v59, 1  ;;  %v315_v0 = vrot.slane %v313_v60, 1 }
  0xc2   : > { %970 = vmatpush.bf16.msrb.mxu2 %v1423_v52 }
  0xc3   : > { %v309_v2 = vor.u32 %v308_v62, %v304_v61  ;;  %v316_v3 = vor.u32 %v315_v0, %v311_v63  ;;  %983 = vmatpush.bf16.msrb.mxu3 %v1431_v53  ;;  %v648_v61 = vld [vmem:[#allocation2 + $0x8] sm:$0x1] }
  0xc5   : > { %610 = vmatmul.bf16.vlgmr.msra.gmra.mxu2 %v309_v2  ;;  %623 = vmatmul.bf16.vlgmr.msra.gmra.mxu3 %v316_v3 }
  0xc6   : > { %971 = vmatpush.bf16.msrb.mxu2 %v1422_v54 }
  0xc7   : > { %984 = vmatpush.bf16.msrb.mxu3 %v1430_v55 }
  0xca   : > { %972 = vmatpush.bf16.msrb.mxu2 %v1421_v56 }
  0xcb   : > { %985 = vmatpush.bf16.msrb.mxu3 %v1429_v57 }
 0x134   : > { %v585_v4 = vpop.f32.mrf.mxu0  ;;  %v598_v5 = vpop.f32.mrf.mxu1 }
 0x135   : > { %v586_v15 = vadd.f32 %v1508_v8, %v585_v4 }
 0x137   : > { %v599_v18 = vadd.f32 %v598_v5, %v586_v15 }
 0x13c   : > { %v587_v6 = vpop.f32.mrf.mxu0  ;;  %v600_v7 = vpop.f32.mrf.mxu1 }
 0x148   : > { %v611_v19 = vpop.f32.mrf.mxu2  ;;  %v624_v20 = vpop.f32.mrf.mxu3 }
 0x149   : > { %v612_v21 = vadd.f32 %v611_v19, %v599_v18 }
 0x14b   : > { %v625_v24 = vadd.f32 %v624_v20, %v612_v21  ;;  %v1509_v21 = vld [vmem:[%s1892_s3 + $0x1] ss:$0 sm:$0xff] }
 0x14d   : > { %v628_v25 = vmax.f32 %v625_v24, 0.0 }
 0x14f   : > { %v629_v28 = vpack.c.bf16 %v628_v25, %v628_v25 }
 0x150   : > { %v613_v29 = vpop.f32.mrf.mxu2  ;;  %v626_v30 = vpop.f32.mrf.mxu3 }
 0x151   : > { %630 = vst.msk [vmem:[#allocation2 + $0x4] sm:$0xf] %vm261_vm0, %v629_v28  ;;  %v632_v31 = vshrl.u32 %v629_v28, 16  ;;  %v635_v33 = vshll.u32 %v629_v28, 16 }
 0x153   : > { %v634_v32 = vrot.slane %v632_v31, 7 }
 0x155   : > { %v637_v34 = vor.u32 %v635_v33, %v634_v32  ;;  %v638_v35 = vrot.slane %v634_v32, 4 }
 0x157   : > { %639 = vrot.lane.b32.xlu1 %v637_v34, %s1677_s23 }
 0x15f   : > { %641 = vrot.lane.b32.xlu1 %v638_v35, %s1677_s23 }
 0x1c9   : > { %v640_v59 = vpop.permute.xlu1 %639 }
 0x1ca   : > { %v646_v60 = vsel %vm1827_vm9, %v640_v59, %v645_v58 }
 0x1cb   : > { %647 = vst [vmem:[#allocation2] sm:$0xf] %v646_v60 }
 0x1d1   : > { %v642_v62 = vpop.permute.xlu1 %641 }
 0x1d2   : > { %v649_v63 = vsel %vm1834_vm11, %v642_v62, %v648_v61  ;;  %v652_v0 = vld [vmem:[#allocation2] sm:$0xff] }
 0x1d3   : > { %650 = vst [vmem:[#allocation2 + $0x8] sm:$0x1] %v649_v63  ;;  %v655_v2 = vunpack.c.l.b16 %v652_v0  ;;  %v656_v3 = vunpack.c.h.b16 %v652_v0 }
 0x1d5   : > { %v657_v4 = vpack.c.b16 %v655_v2, %v655_v2  ;;  %v658_v5 = vpack.c.b16 %v656_v3, %v656_v3 }
 0x1d7   : > { %947 = vmatmul.bf16.vlgmr.msrb.gmra.mxu0 %v657_v4  ;;  %960 = vmatmul.bf16.vlgmr.msrb.gmra.mxu1 %v658_v5 }
 0x1da   : > { %v653_v6 = vld [vmem:[#allocation2 + $0x8] sm:$0x11] }
 0x1db   : > { %v662_v7 = vunpack.c.l.b16 %v653_v6  ;;  %v663_v8 = vunpack.c.h.b16 %v653_v6 }
 0x1dd   : > { %v664_v9 = vpack.c.b16 %v662_v7, %v655_v2  ;;  %v665_v41 = vpack.c.b16 %v663_v8, %v656_v3 }
 0x1df   : > { %v669_v10 = vshll.u32 %v664_v9, 16  ;;  %v676_v11 = vshll.u32 %v665_v41, 16  ;;  %v667_v12 = vshrl.u32 %v664_v9, 16  ;;  %v674_v45 = vshrl.u32 %v665_v41, 16 }
 0x1e1   : > { %v671_v13 = vrot.slane %v669_v10, 1  ;;  %v678_v14 = vrot.slane %v676_v11, 1 }
 0x1e3   : > { %v672_v15 = vor.u32 %v671_v13, %v667_v12  ;;  %v679_v16 = vor.u32 %v678_v14, %v674_v45 }
 0x1e5   : > { %973 = vmatmul.bf16.vlgmr.msrb.gmra.mxu2 %v672_v15  ;;  %986 = vmatmul.bf16.vlgmr.msrb.gmra.mxu3 %v679_v16 }
 0x254   : > { %v948_v17 = vpop.f32.mrf.mxu0  ;;  %v961_v18 = vpop.f32.mrf.mxu1 }
 0x255   : > { %v949_v22 = vadd.f32 %v1509_v21, %v948_v17 }
 0x257   : > { %v962_v23 = vadd.f32 %v961_v18, %v949_v22 }
 0x25c   : > { %v950_v19 = vpop.f32.mrf.mxu0  ;;  %v963_v20 = vpop.f32.mrf.mxu1 }
 0x268   : > { %v974_v24 = vpop.f32.mrf.mxu2  ;;  %v987_v25 = vpop.f32.mrf.mxu3 }
 0x269   : > { %v975_v26 = vadd.f32 %v974_v24, %v962_v23 }
 0x26b   : > { %v988_v28 = vadd.f32 %v987_v25, %v975_v26 }
 0x26d   : > { %v992_v29 = vadd.f32 %v991_v27, %v988_v28 }
 0x26f   : > { %v993_v30 = vmax.f32 %v992_v29, 0.0 }
 0x270   : > { %v976_v31 = vpop.f32.mrf.mxu2  ;;  %v989_v32 = vpop.f32.mrf.mxu3 }
 0x271   : > { %v994_v33 = vpack.c.bf16 %v993_v30, %v993_v30 }
 0x273   : > { %995 = vst [vmem:[%s247_s21] sm:$0xf] %v994_v33 }
 0x274   : > { %1627 = shalt.err (!%p1624_p9)
}
 0x275   : > { %1447 = dma.vmem_to_hbm [thread:$0]  (%p1772_p4), %s1010_s24, 64, %s1012_s25, %s997_s22  }
 0x276 PF: > { %s1023_s14 = sand.u32 1, %s1658_s15   ;;  %p1904_p10 = scmp.ge.s32.totalorder %s1670_s18, 2 }
 0x277   : > { %s1024_s30 = scalar_lea.sflag [#allocation5], %s1023_s14 }
 0x278   : > { %p1461_p13 = pnand %p1904_p10, %p1776_p6 }
 0x27a   : > { %p1462_p11 = pneg %p1461_p13 }
 0x27c   : > { %1653 = dma.done.wait (%p1462_p11), %s1024_s30, 64  }
 0x27d   : > { %1655 = vsyncadd (%p1462_p11), %s1024_s30, 4294967232  ;;  %p18_p0 = scmp.ge.s32.totalorder %s1746_s8, 4   ;;  %s1905_s15 = smov %s1662_s16 }
 0x27e   : > { %s1906_s16 = smov %s1666_s17  ;;  %s1907_s17 = smov %s1757_s11 }
 0x27f   : > { %s1908_s18 = smov %s1746_s8  ;;  %20 = sbr.rel (!%p18_p0) target bundleno = 6 (0x6), region = 89 }
 0x284   :  { %1030 = vsyncpa [#allocation4], 1 }
 0x285   :  { %1032 = vsyncpa [#allocation4 + $0x1], 1 }
 0x286   :  { %1033 = vsyncpa [#allocation7], 1 }
 0x287   :  { %1034 = vsyncpa [#allocation5], 1 }
 0x288   :  { %1036 = vsyncpa [#allocation5 + $0x1], 1 }

</bundles_post_ra>
